<compile_context>
chip_gen: v5e
topology: v5e:2x2
jax: 0.10.0
libtpu: 0.0.40
codegen_flags: <defaults>
</compile_context>

<pallas_src>
import jax
import jax.numpy as jnp
from jax.experimental import pallas as pl
from jax.experimental.pallas import tpu as pltpu

LANE = 128                # TPU lane width: pad feature dims to multiples of this
ROW_ALIGN = 16            # bf16 packs 16 rows per sublane group
MAX_BATCH_TILE = 2048     # rows per grid step (few MiB of VMEM per tile)
MIN_ROWS_FOR_SPLIT = 256  # only force >=2 grid steps (v7x 2-TC split) above this


def _cdiv(a, b):
    return -(-a // b)


def _round_up(x, m):
    return _cdiv(x, m) * m


def qnet_kernel(x_ref, w1_ref, b1_ref, w2_ref, b2_ref, w3_ref, b3_ref, o_ref):
    """Whole MLP hot path in-kernel: in-kernel f32->bf16 cast, bf16 matmuls on
    the MXU with f32 accumulation, f32 bias add + ReLU on the VPU, bf16
    lane-dense (128-wide) store."""
    x = x_ref[...].astype(jnp.bfloat16)                               # (TB, S)
    h1 = jnp.dot(x, w1_ref[...], preferred_element_type=jnp.float32) + b1_ref[...]
    h1 = jnp.maximum(h1, 0.0).astype(jnp.bfloat16)                    # (TB, 128)
    h2 = jnp.dot(h1, w2_ref[...], preferred_element_type=jnp.float32) + b2_ref[...]
    h2 = jnp.maximum(h2, 0.0).astype(jnp.bfloat16)                    # (TB, 128)
    out = jnp.dot(h2, w3_ref[...], preferred_element_type=jnp.float32) + b3_ref[...]
    o_ref[...] = out.astype(o_ref.dtype)                              # (TB, 128) bf16


def init_params(key, state_size, action_size,
                input_layer_neurons=64, hidden_layer_neurons=64):
    """Deterministic init mimicking nn.Linear's default U(-1/sqrt(fan_in), +).
    Weights stored as [in, out] (== PyTorch W.T), biases as [1, out]."""
    def linear(k, fan_in, fan_out):
        kw, kb = jax.random.split(k)
        bound = 1.0 / jnp.sqrt(jnp.float32(fan_in))
        w = jax.random.uniform(kw, (fan_in, fan_out), jnp.float32, -bound, bound)
        b = jax.random.uniform(kb, (1, fan_out), jnp.float32, -bound, bound)
        return w, b

    k1, k2, k3 = jax.random.split(key, 3)
    w1, b1 = linear(k1, state_size, input_layer_neurons)
    w2, b2 = linear(k2, input_layer_neurons, hidden_layer_neurons)
    w3, b3 = linear(k3, hidden_layer_neurons, action_size)
    return {"w1": w1, "b1": b1, "w2": w2, "b2": b2, "w3": w3, "b3": b3}


def prepare_params(params):
    """One-time prep: zero-pad hidden/output feature dims up to 128 lanes and
    cast weights to bf16 (biases stay f32).  Zero padding is exact: padded
    hidden columns produce relu(0)=0 and padded weight rows multiply zeros."""
    h1p = _round_up(params["w1"].shape[1], LANE)
    h2p = _round_up(params["w2"].shape[1], LANE)
    aop = _round_up(params["w3"].shape[1], LANE)

    def pad2(a, rows, cols):
        r, c = a.shape
        return jnp.pad(a, ((0, rows - r), (0, cols - c)))

    return {
        "w1": pad2(params["w1"], params["w1"].shape[0], h1p).astype(jnp.bfloat16),
        "b1": pad2(params["b1"], 1, h1p),                         # f32
        "w2": pad2(params["w2"], h1p, h2p).astype(jnp.bfloat16),
        "b2": pad2(params["b2"], 1, h2p),                         # f32
        "w3": pad2(params["w3"], h2p, aop).astype(jnp.bfloat16),
        "b3": pad2(params["b3"], 1, aop),                         # f32
    }


def _batch_tiling(B):
    """Choose (TB, nb, B_pad).  Small batches: one full-array block (no pad).
    Large batches: even number of >=2 grid steps (so v7x's two TensorCores
    both get work), 16-row-aligned tiles for bf16 sublane packing."""
    nb = max(1, _cdiv(B, MAX_BATCH_TILE))
    if B >= MIN_ROWS_FOR_SPLIT:
        nb = max(nb, 2)
        if nb % 2:
            nb += 1
    if nb == 1:
        return B, 1, B               # full-array block: always layout-legal, no pad
    TB = _round_up(_cdiv(B, nb), ROW_ALIGN)
    return TB, nb, nb * TB


def qnetwork_forward(state, prepared, action_size):
    """state: [B, state_size] f32.  prepared: output of prepare_params.
    Returns [B, action_size] bf16 Q-values."""
    w1, b1, w2, b2, w3, b3 = (prepared[k] for k in ("w1", "b1", "w2", "b2", "w3", "b3"))
    B, S = state.shape
    a_pad = w3.shape[1]

    TB, nb, B_pad = _batch_tiling(B)

    x = state                                   # keep f32; cast happens in-kernel
    if B_pad != B:
        x = jnp.pad(x, ((0, B_pad - B), (0, 0)))

    # Weights/biases: full-array blocks with a constant block index so they are
    # DMA'd into VMEM once and stay resident across the whole batch grid.
    resident = lambda shape: pl.BlockSpec(shape, lambda b: (0, 0))

    flops = 2 * B_pad * (S * w1.shape[1]
                         + w2.shape[0] * w2.shape[1]
                         + w3.shape[0] * w3.shape[1])
    bytes_accessed = (x.size * x.dtype.itemsize
                      + B_pad * a_pad * 2        # bf16 output
                      + sum(a.size * a.dtype.itemsize
                            for a in (w1, b1, w2, b2, w3, b3)))
    cost = pl.CostEstimate(flops=flops, transcendentals=0,
                           bytes_accessed=bytes_accessed)

    out = pl.pallas_call(
        qnet_kernel,
        out_shape=jax.ShapeDtypeStruct((B_pad, a_pad), jnp.bfloat16),
        grid=(nb,),
        in_specs=[
            pl.BlockSpec((TB, S), lambda b: (b, 0)),   # f32 state tile per step
            resident(w1.shape), resident(b1.shape),
            resident(w2.shape), resident(b2.shape),
            resident(w3.shape), resident(b3.shape),
        ],
        out_specs=pl.BlockSpec((TB, a_pad), lambda b: (b, 0)),  # lane-dense bf16
        compiler_params=pltpu.CompilerParams(
            dimension_semantics=("parallel",),   # v7x: split batch over 2 TCs
        ),
        cost_estimate=cost,
    )(x, w1, b1, w2, b2, w3, b3)

    return out[:B, :action_size]


def qnetwork_ref(state, prepared, action_size):
    """Pure-JAX reference with identical bf16/f32 mixed precision."""
    x = state.astype(jnp.bfloat16)
    h1 = jnp.maximum(
        jnp.dot(x, prepared["w1"], preferred_element_type=jnp.float32) + prepared["b1"], 0.0
    ).astype(jnp.bfloat16)
    h2 = jnp.maximum(
        jnp.dot(h1, prepared["w2"], preferred_element_type=jnp.float32) + prepared["b2"], 0.0
    ).astype(jnp.bfloat16)
    out = jnp.dot(h2, prepared["w3"], preferred_element_type=jnp.float32) + prepared["b3"]
    return out[:, :action_size].astype(jnp.bfloat16)


if __name__ == "__main__":
    key = jax.random.PRNGKey(0)
    k_params, k_s1, k_s2 = jax.random.split(key, 3)

    state_size = 8       # LunarLander-style observation dim
    action_size = 4

    raw_params = init_params(k_params, state_size, action_size)
    params = prepare_params(raw_params)   # pad to 128 lanes + bf16 weights (once)

    # Small single-tile case: grid=(1,), full-array block, no batch padding.
    state = jax.random.normal(k_s1, (8, state_size), jnp.float32)
    q = jax.block_until_ready(qnetwork_forward(state, params, action_size))
    ref = qnetwork_ref(state, params, action_size)
    assert q.shape == (8, action_size) and q.dtype == jnp.bfloat16
    assert jnp.allclose(q.astype(jnp.float32), ref.astype(jnp.float32),
                        atol=2e-2, rtol=2e-2), \
        float(jnp.max(jnp.abs(q.astype(jnp.float32) - ref.astype(jnp.float32))))

    # Larger batch: exercises the 2-grid-step, 16-row-aligned, padded path.
    state2 = jax.random.normal(k_s2, (300, state_size), jnp.float32)
    q2 = jax.block_until_ready(qnetwork_forward(state2, params, action_size))
    ref2 = qnetwork_ref(state2, params, action_size)
    assert q2.shape == (300, action_size)
    assert jnp.allclose(q2.astype(jnp.float32), ref2.astype(jnp.float32),
                        atol=2e-2, rtol=2e-2), \
        float(jnp.max(jnp.abs(q2.astype(jnp.float32) - ref2.astype(jnp.float32))))

    print("KERNEL_OK")
</pallas_src>

<mosaic_0001>
module attributes {stable_mosaic.version = 11 : i64} {
  func.func @qnet_kernel(%arg0: i32, %arg1: memref<8x8xf32, #tpu.memory_space<vmem>>, %arg2: memref<8x128xbf16, #tpu.memory_space<vmem>>, %arg3: memref<1x128xf32, #tpu.memory_space<vmem>>, %arg4: memref<128x128xbf16, #tpu.memory_space<vmem>>, %arg5: memref<1x128xf32, #tpu.memory_space<vmem>>, %arg6: memref<128x128xbf16, #tpu.memory_space<vmem>>, %arg7: memref<1x128xf32, #tpu.memory_space<vmem>>, %arg8: memref<8x128xbf16, #tpu.memory_space<vmem>>) attributes {dimension_semantics = [#tpu.dimension_semantics<parallel>], iteration_bounds = array<i64: 1>, scalar_prefetch = 0 : i64, scratch_operands = 0 : i64, tpu.core_type = #tpu.core_type<tc>, window_params = [{transform_indices = @transform_0, window_bounds = array<i64: 8, 8>}, {pipeline_mode = #tpu.pipeline_mode<synchronous>, transform_indices = @transform_1, window_bounds = array<i64: 8, 128>}, {pipeline_mode = #tpu.pipeline_mode<synchronous>, transform_indices = @transform_2, window_bounds = array<i64: 1, 128>}, {pipeline_mode = #tpu.pipeline_mode<synchronous>, transform_indices = @transform_3, window_bounds = array<i64: 128, 128>}, {pipeline_mode = #tpu.pipeline_mode<synchronous>, transform_indices = @transform_4, window_bounds = array<i64: 1, 128>}, {pipeline_mode = #tpu.pipeline_mode<synchronous>, transform_indices = @transform_5, window_bounds = array<i64: 128, 128>}, {pipeline_mode = #tpu.pipeline_mode<synchronous>, transform_indices = @transform_6, window_bounds = array<i64: 1, 128>}, {transform_indices = @transform_7, window_bounds = array<i64: 8, 128>}]} {
    %c0 = arith.constant 0 : index
    %c0_0 = arith.constant 0 : index
    %0 = vector.load %arg1[%c0, %c0_0] : memref<8x8xf32, #tpu.memory_space<vmem>>, vector<8x8xf32>
    %1 = arith.truncf %0 : vector<8x8xf32> to vector<8x8xbf16>
    %c0_1 = arith.constant 0 : index
    %c0_2 = arith.constant 0 : index
    %2 = vector.load %arg2[%c0_1, %c0_2] : memref<8x128xbf16, #tpu.memory_space<vmem>>, vector<8x128xbf16>
    %cst = arith.constant dense<0.000000e+00> : vector<8x128xf32>
    %3 = tpu.matmul %1, %2, %cst {dimension_numbers = #tpu.dot_dimension_numbers<[1], [0], [0], [1], [0, 0, 1, 1], [], []>} : vector<8x8xbf16>, vector<8x128xbf16>, vector<8x128xf32> -> vector<8x128xf32>
    %c0_3 = arith.constant 0 : index
    %c0_4 = arith.constant 0 : index
    %4 = vector.load %arg3[%c0_3, %c0_4] : memref<1x128xf32, #tpu.memory_space<vmem>>, vector<1x128xf32>
    %5 = vector.broadcast %4 : vector<1x128xf32> to vector<8x128xf32>
    %6 = arith.addf %3, %5 : vector<8x128xf32>
    %cst_5 = arith.constant 0.000000e+00 : f32
    %7 = vector.broadcast %cst_5 : f32 to vector<8x128xf32>
    %8 = arith.maximumf %6, %7 : vector<8x128xf32>
    %9 = arith.truncf %8 : vector<8x128xf32> to vector<8x128xbf16>
    %c0_6 = arith.constant 0 : index
    %c0_7 = arith.constant 0 : index
    %10 = vector.load %arg4[%c0_6, %c0_7] : memref<128x128xbf16, #tpu.memory_space<vmem>>, vector<128x128xbf16>
    %cst_8 = arith.constant dense<0.000000e+00> : vector<8x128xf32>
    %11 = tpu.matmul %9, %10, %cst_8 {dimension_numbers = #tpu.dot_dimension_numbers<[1], [0], [0], [1], [0, 0, 1, 1], [], []>} : vector<8x128xbf16>, vector<128x128xbf16>, vector<8x128xf32> -> vector<8x128xf32>
    %c0_9 = arith.constant 0 : index
    %c0_10 = arith.constant 0 : index
    %12 = vector.load %arg5[%c0_9, %c0_10] : memref<1x128xf32, #tpu.memory_space<vmem>>, vector<1x128xf32>
    %13 = vector.broadcast %12 : vector<1x128xf32> to vector<8x128xf32>
    %14 = arith.addf %11, %13 : vector<8x128xf32>
    %cst_11 = arith.constant 0.000000e+00 : f32
    %15 = vector.broadcast %cst_11 : f32 to vector<8x128xf32>
    %16 = arith.maximumf %14, %15 : vector<8x128xf32>
    %17 = arith.truncf %16 : vector<8x128xf32> to vector<8x128xbf16>
    %c0_12 = arith.constant 0 : index
    %c0_13 = arith.constant 0 : index
    %18 = vector.load %arg6[%c0_12, %c0_13] : memref<128x128xbf16, #tpu.memory_space<vmem>>, vector<128x128xbf16>
    %cst_14 = arith.constant dense<0.000000e+00> : vector<8x128xf32>
    %19 = tpu.matmul %17, %18, %cst_14 {dimension_numbers = #tpu.dot_dimension_numbers<[1], [0], [0], [1], [0, 0, 1, 1], [], []>} : vector<8x128xbf16>, vector<128x128xbf16>, vector<8x128xf32> -> vector<8x128xf32>
    %c0_15 = arith.constant 0 : index
    %c0_16 = arith.constant 0 : index
    %20 = vector.load %arg7[%c0_15, %c0_16] : memref<1x128xf32, #tpu.memory_space<vmem>>, vector<1x128xf32>
    %21 = vector.broadcast %20 : vector<1x128xf32> to vector<8x128xf32>
    %22 = arith.addf %19, %21 : vector<8x128xf32>
    %23 = arith.truncf %22 : vector<8x128xf32> to vector<8x128xbf16>
    %c0_17 = arith.constant 0 : index
    %c0_18 = arith.constant 0 : index
    %24 = vector.load %arg8[%c0_17, %c0_18] : memref<8x128xbf16, #tpu.memory_space<vmem>>, vector<8x128xbf16>
    tpu.vector_store %arg8[%c0_17, %c0_18], %23 {strides = array<i32>} : memref<8x128xbf16, #tpu.memory_space<vmem>>, vector<8x128xbf16>,
    return
  }
  func.func @transform_0(%arg0: i32) -> (i32, i32) {
    %c0_i32 = arith.constant 0 : i32
    %c0_i32_0 = arith.constant 0 : i32
    return %arg0, %c0_i32 : i32, i32
  }
  func.func @transform_1(%arg0: i32) -> (i32, i32) {
    %c0_i32 = arith.constant 0 : i32
    %c0_i32_0 = arith.constant 0 : i32
    %c0_i32_1 = arith.constant 0 : i32
    return %c0_i32, %c0_i32_0 : i32, i32
  }
  func.func @transform_2(%arg0: i32) -> (i32, i32) {
    %c0_i32 = arith.constant 0 : i32
    %c0_i32_0 = arith.constant 0 : i32
    %c0_i32_1 = arith.constant 0 : i32
    return %c0_i32, %c0_i32_0 : i32, i32
  }
  func.func @transform_3(%arg0: i32) -> (i32, i32) {
    %c0_i32 = arith.constant 0 : i32
    %c0_i32_0 = arith.constant 0 : i32
    %c0_i32_1 = arith.constant 0 : i32
    return %c0_i32, %c0_i32_0 : i32, i32
  }
  func.func @transform_4(%arg0: i32) -> (i32, i32) {
    %c0_i32 = arith.constant 0 : i32
    %c0_i32_0 = arith.constant 0 : i32
    %c0_i32_1 = arith.constant 0 : i32
    return %c0_i32, %c0_i32_0 : i32, i32
  }
  func.func @transform_5(%arg0: i32) -> (i32, i32) {
    %c0_i32 = arith.constant 0 : i32
    %c0_i32_0 = arith.constant 0 : i32
    %c0_i32_1 = arith.constant 0 : i32
    return %c0_i32, %c0_i32_0 : i32, i32
  }
  func.func @transform_6(%arg0: i32) -> (i32, i32) {
    %c0_i32 = arith.constant 0 : i32
    %c0_i32_0 = arith.constant 0 : i32
    %c0_i32_1 = arith.constant 0 : i32
    return %c0_i32, %c0_i32_0 : i32, i32
  }
  func.func @transform_7(%arg0: i32) -> (i32, i32) {
    %c0_i32 = arith.constant 0 : i32
    %c0_i32_0 = arith.constant 0 : i32
    return %arg0, %c0_i32 : i32, i32
  }
}

</mosaic_0001>

<bundles_post_ra>
// kernel: tpu_custom_call.1
= control target key start
LH: loop header
LB: loop body
LE: loop exit
PB: predicated region body
PF: predicated region fallthrough
CT: control target
= control target key end

     0   :  { %12 = vsyncpa [#allocation3], 0  ;;  %s592_s0 = inlined_call_operand.hbm [shape: f32[8,8], index: 0, kind: input, shape index: {}]   ;;  %s593_s1 = inlined_call_operand.hbm [shape: bf16[8,128], index: 1, kind: input, shape index: {}]   ;;  %s594_s2 = inlined_call_operand.vmem [shape: f32[1,128], index: 2, kind: input, shape index: {}]   ;;  %s595_s3 = inlined_call_operand.hbm [shape: bf16[128,128], index: 3, kind: input, shape index: {}]   ;;  %s596_s4 = inlined_call_operand.vmem [shape: f32[1,128], index: 4, kind: input, shape index: {}]   ;;  %s597_s5 = inlined_call_operand.hbm [shape: bf16[128,128], index: 5, kind: input, shape index: {}]   ;;  %s598_s6 = inlined_call_operand.vmem [shape: f32[1,128], index: 6, kind: input, shape index: {}]   ;;  %s599_s7 = inlined_call_operand.hbm [shape: bf16[8,128], index: 7, kind: output, shape index: {}]  }
   0x1   :  { %13 = vsyncpa [#allocation6], 0 }
   0x2   :  { %14 = vsyncpa [#allocation9], 0  ;;  %s32_s26 = sshll.u32 %s593_s1, 4  ;;  %s33_s26 = int_to_ptr.hbm [resolvable:$true] %s32_s26 }
   0x3   :  { %15 = vsyncpa [#allocation4], 0  ;;  %s521_s27 = smov [#allocation5]   ;;  %s21_s8 = sshll.u32 %s592_s0, 4  ;;  %s22_s8 = int_to_ptr.hbm [resolvable:$true] %s21_s8 }
   0x4   :  { %s34_s28 = sshll.u32 %s521_s27, 4  ;;  %s522_s9 = smov [#allocation2]   ;;  %s35_s28 = int_to_ptr.vmem [resolvable:$true] %s34_s28 }
   0x5   :  { %37 = dma.hbm_to_vmem [thread:$0]  %s33_s26, 64, %s35_s28, [#allocation6]  }
   0x6   :  { %s23_s10 = sshll.u32 %s522_s9, 4  ;;  %s44_s13 = sshll.u32 %s595_s3, 4  ;;  %s24_s10 = int_to_ptr.vmem [resolvable:$true] %s23_s10  ;;  %s45_s13 = int_to_ptr.hbm [resolvable:$true] %s44_s13 }
   0x7   :  { %26 = dma.hbm_to_vmem [thread:$0]  %s22_s8, 128, %s24_s10, [#allocation3]  }
   0x8   :  { %s523_s1 = smov [#allocation7]   ;;  %s59_s17 = sshll.u32 %s597_s5, 4  ;;  %s60_s17 = int_to_ptr.hbm [resolvable:$true] %s59_s17 }
   0x9   :  { %s46_s14 = sshll.u32 %s523_s1, 4  ;;  %s524_s18 = smov 64   ;;  %s47_s14 = int_to_ptr.vmem [resolvable:$true] %s46_s14 }
   0xa   :  { %s525_s0 = smov 4   ;;  %s526_s19 = smov [#allocation8]  }
   0xb   :  { %52 = dma.hbm_to_vmem [thread:$0]  %s45_s13, 1024, %s47_s14, [#allocation6], %s524_s18, %s524_s18, %s525_s0  }
   0xc   :  { %s61_s20 = sshll.u32 %s526_s19, 4  ;;  %s62_s20 = int_to_ptr.vmem [resolvable:$true] %s61_s20 }
   0xd   :  { %67 = dma.hbm_to_vmem [thread:$0]  %s60_s17, 1024, %s62_s20, [#allocation9], %s524_s18, %s524_s18, %s525_s0  }
   0xe   :  { %513 = dma.done.wait [#allocation3], 128  }
   0xf   :  { %514 = vsyncadd [#allocation3], 4294967168 }
  0x10   :  { %515 = dma.done.wait [#allocation6], 1088  }
  0x11   :  { %516 = vsyncadd [#allocation6], 4294966208 }
  0x12   :  { %517 = dma.done.wait [#allocation9], 1024  }
  0x13   :  { %518 = vsyncadd [#allocation9], 4294966272  ;;  %vm98_vm0 = vcmask 1043456   ;;  %v89_v0 = vld [vmem:[#allocation5] sm:$0xf]  ;;  %v87_v1 = vld [vmem:[#allocation2] sm:$0xff] }
  0x14   :  { %v374_v2 = vld [vmem:[#allocation7 + $0x38] sm:$0xff]  ;;  %v100_v3 = vsel %vm98_vm0, %v89_v0, 0  ;;  %v88_v4 = vpack.c.bf16 %v87_v1, %v87_v1  ;;  %vm94_vm1 = vcmask 64512   ;;  %v373_v5 = vld [vmem:[#allocation7 + $0x30] sm:$0xff]  ;;  %v372_v6 = vld [vmem:[#allocation7 + $0x28] sm:$0xff]  ;;  %s527_s24 = smov [#allocation10]  }
  0x15   :  { %109 = vmatpush.bf16.msra.mxu0 %v100_v3  ;;  %185 = vmatpush.bf16.msra.mxu1 %v374_v2  ;;  %v371_v7 = vld [vmem:[#allocation7 + $0x20] sm:$0xff]  ;;  %v370_v8 = vld [vmem:[#allocation7 + $0x18] sm:$0xff]  ;;  %v369_v9 = vld [vmem:[#allocation7 + $0x10] sm:$0xff]  ;;  %s288_s25 = sshll.u32 %s527_s24, 4  ;;  %s290_s28 = sshll.u32 %s599_s7, 4  ;;  %s289_s25 = int_to_ptr.vmem [resolvable:$true] %s288_s25  ;;  %s291_s28 = int_to_ptr.hbm [resolvable:$true] %s290_s28 }
  0x16   :  { %v368_v10 = vld [vmem:[#allocation7 + $0x8] sm:$0xff]  ;;  %v367_v11 = vld [vmem:[#allocation7] sm:$0xff]  ;;  %v382_v12 = vld [vmem:[#allocation8 + $0x38] sm:$0xff] }
  0x17   :  { %268 = vmatpush.bf16.msra.mxu2 %v382_v12  ;;  %v381_v13 = vld [vmem:[#allocation8 + $0x30] sm:$0xff]  ;;  %v380_v14 = vld [vmem:[#allocation8 + $0x28] sm:$0xff]  ;;  %v379_v15 = vld [vmem:[#allocation8 + $0x20] sm:$0xff] }
  0x18   :  { %302 = vmatmul.msk.bf16.vlgmr.msra.gmra.mxu0 %vm94_vm1, %v88_v4  ;;  %v378_v16 = vld [vmem:[#allocation8 + $0x18] sm:$0xff]  ;;  %v377_v17 = vld [vmem:[#allocation8 + $0x10] sm:$0xff]  ;;  %v376_v24 = vld [vmem:[#allocation8 + $0x8] sm:$0xff] }
  0x19   :  { %186 = vmatpush.bf16.msra.mxu1 %v373_v5  ;;  %v390_v18 = vld [vmem:[%s594_s2] ss:$0 sm:$0xff]  ;;  %v375_v25 = vld [vmem:[#allocation8] sm:$0xff] }
  0x1a   :  { %v391_v26 = vld [vmem:[%s596_s4] ss:$0 sm:$0xff] }
  0x1b   :  { %269 = vmatpush.bf16.msra.mxu2 %v381_v13  ;;  %v392_v32 = vld [vmem:[%s598_s6] ss:$0 sm:$0xff] }
  0x1d   :  { %187 = vmatpush.bf16.msra.mxu1 %v372_v6 }
  0x1f   :  { %270 = vmatpush.bf16.msra.mxu2 %v380_v14 }
  0x21   :  { %188 = vmatpush.bf16.msra.mxu1 %v371_v7 }
  0x23   :  { %271 = vmatpush.bf16.msra.mxu2 %v379_v15 }
  0x25   :  { %189 = vmatpush.bf16.msra.mxu1 %v370_v8 }
  0x27   :  { %272 = vmatpush.bf16.msra.mxu2 %v378_v16 }
  0x29   :  { %190 = vmatpush.bf16.msra.mxu1 %v369_v9 }
  0x2b   :  { %273 = vmatpush.bf16.msra.mxu2 %v377_v17 }
  0x2d   :  { %191 = vmatpush.bf16.msra.mxu1 %v368_v10 }
  0x2f   :  { %274 = vmatpush.bf16.msra.mxu2 %v376_v24 }
  0x31   :  { %192 = vmatpush.bf16.msra.mxu1 %v367_v11 }
  0x33   :  { %275 = vmatpush.bf16.msra.mxu2 %v375_v25 }
  0x95   :  { %v111_v19 = vpop.f32.mrf.mxu0 }
  0x96   :  { %v112_v20 = vadd.f32 %v390_v18, %v111_v19 }
  0x98   :  { %v115_v21 = vmax.f32 %v112_v20, 0.0 }
  0x9a   :  { %v116_v22 = vpack.c.bf16 %v115_v21, %v115_v21 }
  0x9c   :  { %193 = vmatmul.bf16.vlgmr.msra.gmra.mxu1 %v116_v22 }
  0x9d   :  { %v113_v23 = vpop.f32.mrf.mxu0 }
 0x119   :  { %v194_v27 = vpop.f32.mrf.mxu1 }
 0x11a   :  { %v195_v28 = vadd.f32 %v391_v26, %v194_v27 }
 0x11c   :  { %v198_v29 = vmax.f32 %v195_v28, 0.0 }
 0x11e   :  { %v199_v30 = vpack.c.bf16 %v198_v29, %v198_v29 }
 0x120   :  { %276 = vmatmul.bf16.vlgmr.msra.gmra.mxu2 %v199_v30 }
 0x121   :  { %v196_v31 = vpop.f32.mrf.mxu1 }
 0x1a3   :  { %v277_v33 = vpop.f32.mrf.mxu2 }
 0x1a4   :  { %v278_v34 = vadd.f32 %v392_v32, %v277_v33 }
 0x1a6   :  { %v281_v35 = vpack.c.bf16 %v278_v34, %v278_v34 }
 0x1a8   :  { %282 = vst [vmem:[#allocation10] sm:$0xf] %v281_v35 }
 0x1a9   :  { %293 = dma.vmem_to_hbm [thread:$0]  %s289_s25, 64, %s291_s28, [#allocation4]  }
 0x1ab   :  { %v279_v36 = vpop.f32.mrf.mxu2 }
 0x1ac   :  { %519 = dma.done.wait [#allocation4], 64  }
 0x1ad   :  { %520 = vsyncadd [#allocation4], 4294967232 }
 0x1ae   :  { %298 = vsyncpa [#allocation3], 1 }
 0x1af   :  { %299 = vsyncpa [#allocation6], 1 }
 0x1b0   :  { %300 = vsyncpa [#allocation9], 1 }
 0x1b1   :  { %301 = vsyncpa [#allocation4], 1 }

</bundles_post_ra>
